<compile_context>
chip_gen: v7x
topology: tpu7x:2x2x1
jax: 0.10.0
libtpu: 0.0.40
codegen_flags: <defaults>
</compile_context>

<pallas_src>
import jax
import jax.numpy as jnp
from jax.experimental import pallas as pl
from jax.experimental.pallas import tpu as pltpu

H = 32          # config.model.hidden_size
S = 8           # number of tokens (sequence length)
VOCAB = 64      # small synthetic vocab for the embedding table
NUM_HEADS = 2   # num_speculative_tokens - 2
N_RES = 5       # ResBlocks per mlp head (after the leading noResBlock)
TS_MAX = 2048   # max rows per grid step (per-step VMEM stays tiny at these widths)


# ----------------------------------------------------------------------------
# Fused kernel (one grid step = one row tile):
#   fc = [emb | prev] @ Wfc                 (single K=2H matmul)
#   fc[positions == 0] = 0
#   t  = [fc  | prev] @ W0_stacked + b0     (all heads stacked on the output dim)
#   h  = SiLU(t)
#   5x: h = h + SiLU(h @ Wbd[i] + bbd[i])   (block-diagonal per head)
#   out slab = [ fc | h | zero-pad ]        (one unmasked 128-lane-multiple store)
# ----------------------------------------------------------------------------
def _gumiho_fused_kernel(emb_ref, prev_ref, pos_ref,
                         wfc_ref, w0_ref, b0_ref, wbd_ref, bbd_ref,
                         out_ref):
    wdt = wfc_ref.dtype
    emb = emb_ref[...].astype(wdt)
    prev = prev_ref[...].astype(wdt)

    # ---- fc + position-0 masking (single K=2H matmul; concat is a VMEM lane shuffle) ----
    x = jnp.concatenate([emb, prev], axis=-1)                        # (ts, 2H)
    fc = jnp.dot(x, wfc_ref[...], preferred_element_type=jnp.float32)  # (ts, H) f32
    fc = jnp.where(pos_ref[...] == 0, 0.0, fc)

    # ---- all mlp heads jointly; the (ts, 2H) mlp_input never touches HBM ----
    y = jnp.concatenate([fc.astype(wdt), prev], axis=-1)             # (ts, 2H)
    t = jnp.dot(y, w0_ref[...], preferred_element_type=jnp.float32) + b0_ref[...]
    h = t * jax.nn.sigmoid(t)                                        # SiLU in f32 (v5e-safe)
    for i in range(N_RES):                                           # static unroll (5 dependent matmuls)
        u = (jnp.dot(h.astype(wdt), wbd_ref[i], preferred_element_type=jnp.float32)
             + bbd_ref[i])
        h = h + u * jax.nn.sigmoid(u)                                # identity skip + SiLU

    # ---- single lane-dense output slab: [fc | heads | zero pad] ----
    pad = out_ref.shape[-1] - fc.shape[-1] - h.shape[-1]
    pieces = [fc, h]
    if pad:
        pieces.append(jnp.zeros((fc.shape[0], pad), jnp.float32))
    out_ref[...] = jnp.concatenate(pieces, axis=-1).astype(out_ref.dtype)


# ----------------------------------------------------------------------------
# One-time (weight-load time) parameter preparation — hoisted out of hot path.
# ----------------------------------------------------------------------------
def prepare_gumiho_params(w_fc, head_params, dtype=jnp.float32):
    """w_fc: (H, 2H) torch Linear(2H, H, bias=False).weight layout.
    head_params: list of (w0 (H,2H), b0 (H,), wr (N_RES,H,H), br (N_RES,H))."""
    nh = len(head_params)
    # Block-diagonal ResBlock weights are only sensible while NH*H fits one MXU tile.
    # TODO(synk): beyond NH*H > 128, switch to per-head (N_RES, NH, H, H) batched matmuls.
    assert nh * H <= 128, "block-diag ResBlock path assumes NH*H <= 128"

    wfc = jnp.asarray(w_fc.T, dtype)                                   # (2H, H)
    # noResBlock weights: stack heads along the output dim -> (2H, NH*H).
    w0 = jnp.concatenate([hp[0].T for hp in head_params], axis=1).astype(dtype)
    b0 = jnp.concatenate([hp[1] for hp in head_params]
                         ).reshape(1, nh * H).astype(jnp.float32)
    # ResBlock weights: block-diagonal per level (NH*H, NH*H); biases stacked.
    wbd = jnp.zeros((N_RES, nh * H, nh * H), dtype)
    bbd = jnp.zeros((N_RES, 1, nh * H), jnp.float32)
    for hd, (_, _, wr, br) in enumerate(head_params):
        lo, hi = hd * H, (hd + 1) * H
        for i in range(N_RES):
            wbd = wbd.at[i, lo:hi, lo:hi].set(wr[i].T.astype(dtype))
            bbd = bbd.at[i, 0, lo:hi].set(br[i].astype(jnp.float32))
    return dict(num_heads=nh, wfc=wfc, w0=w0, b0=b0, wbd=wbd, bbd=bbd)


# ----------------------------------------------------------------------------
# Forward wrapper: one pallas_call, grid over row tiles (partial final block OK).
# ----------------------------------------------------------------------------
def gumiho_fused_forward(inputs_embeds, prev_hidden, positions, params):
    """Returns (fc_out (S, H), heads_out (S, NUM_HEADS*H))."""
    nh = params["num_heads"]
    s = inputs_embeds.shape[0]
    out_w = pl.cdiv((1 + nh) * H, 128) * 128                 # lane-dense output slab width

    # Row tile: bucket via next_power_of_2 so nearby S share a tile size; for
    # S > TS_MAX the grid has >= 2 parallel steps (feeds both v7x TensorCores).
    ts = min(TS_MAX, max(8, int(pl.next_power_of_2(s))))
    grid = (pl.cdiv(s, ts),)

    pos2d = positions.reshape(s, 1).astype(jnp.int32)
    act_dtype = inputs_embeds.dtype

    # Grid-invariant weight blocks.  NOTE: at production hidden sizes, single-buffer
    # these (pipeline_mode=pl.Buffered(1)) to halve their VMEM; irrelevant at H=32.
    def wspec(shape):
        return pl.BlockSpec(shape, lambda i: (0,) * len(shape))

    slab = pl.pallas_call(
        _gumiho_fused_kernel,
        out_shape=jax.ShapeDtypeStruct((s, out_w), act_dtype),
        grid_spec=pltpu.PrefetchScalarGridSpec(
            num_scalar_prefetch=0,
            grid=grid,
            in_specs=[
                pl.BlockSpec((ts, H), lambda i: (i, 0)),      # inputs_embeds
                pl.BlockSpec((ts, H), lambda i: (i, 0)),      # previous_hidden_states
                pl.BlockSpec((ts, 1), lambda i: (i, 0)),      # positions
                wspec((2 * H, H)),                            # wfc  (2H, H)
                wspec((2 * H, nh * H)),                       # w0   (2H, NH*H) stacked heads
                wspec((1, nh * H)),                           # b0
                wspec((N_RES, nh * H, nh * H)),               # block-diag ResBlock weights
                wspec((N_RES, 1, nh * H)),                    # stacked ResBlock biases
            ],
            out_specs=pl.BlockSpec((ts, out_w), lambda i: (i, 0)),
        ),
        compiler_params=pltpu.CompilerParams(dimension_semantics=("parallel",)),
    )(inputs_embeds, prev_hidden, pos2d,
      params["wfc"], params["w0"], params["b0"], params["wbd"], params["bbd"])

    fc_out = slab[:, :H]
    heads_out = slab[:, H:H + nh * H]
    return fc_out, heads_out


# ----------------------------------------------------------------------------
# Pure-JAX references (mirror the PyTorch semantics) for correctness checking.
# HIGHEST precision so the f32 XLA reference matches Mosaic's f32 matmul path.
# ----------------------------------------------------------------------------
_HI = jax.lax.Precision.HIGHEST


def _silu(x):
    return x * jax.nn.sigmoid(x)


def ref_fc(emb, prev, positions, w_fc):
    y = jnp.dot(jnp.concatenate([emb, prev], axis=-1), w_fc.T, precision=_HI)
    return jnp.where((positions == 0)[:, None], 0.0, y)


def ref_mlp_head(x, w0, b0, wr, br):
    h = _silu(jnp.dot(x, w0.T, precision=_HI) + b0)
    for i in range(N_RES):
        h = h + _silu(jnp.dot(h, wr[i].T, precision=_HI) + br[i])
    return h


if __name__ == "__main__":
    key = jax.random.PRNGKey(0)
    ks = jax.random.split(key, 6)

    # Deterministic synthetic parameters (shapes follow the module's __init__).
    embed_table = jax.random.normal(ks[0], (VOCAB, H), jnp.float32) * 0.05
    w_fc = jax.random.normal(ks[1], (H, 2 * H), jnp.float32) * 0.05   # nn.Linear(2H, H, bias=False)

    # mlp heads: noResBlock(2H->H) + 5 ResBlocks(H->H) each.  (torch zero-inits the
    # ResBlock linear weights; small random values exercise real compute — forward
    # semantics are identical.)
    head_params = []
    for h_idx in range(NUM_HEADS):
        kk = jax.random.split(jax.random.fold_in(ks[2], h_idx), 4)
        w0 = jax.random.normal(kk[0], (H, 2 * H), jnp.float32) * 0.05
        b0 = jax.random.normal(kk[1], (H,), jnp.float32) * 0.05
        wr = jax.random.normal(kk[2], (N_RES, H, H), jnp.float32) * 0.05
        br = jax.random.normal(kk[3], (N_RES, H), jnp.float32) * 0.05
        head_params.append((w0, b0, wr, br))

    # One-time weight prep (transpose / head-stacking / block-diag).  On v6e/v7x
    # pass dtype=jnp.bfloat16 for the MXU-native path (f32 accumulation kept);
    # demo uses f32 so the correctness check is tight.
    params = prepare_gumiho_params(w_fc, head_params, dtype=jnp.float32)

    # Inputs.
    input_ids = jax.random.randint(ks[3], (S,), 0, VOCAB)
    positions = jnp.arange(S, dtype=jnp.int32)            # position 0 present -> masked row
    prev_hidden = jax.random.normal(ks[4], (S, H), jnp.float32)

    # Embedding lookup stays as plain-JAX glue: the real table is vocab x hidden in HBM.
    # TODO(synk): fold the gather in-kernel (scalar-prefetch input_ids + HBM DMA of rows).
    inputs_embeds = jnp.take(embed_table, input_ids, axis=0)

    # ---- single fused launch: fc(+mask) and all speculative mlp heads ----
    fc_out, heads_out = gumiho_fused_forward(inputs_embeds, prev_hidden, positions, params)
    jax.block_until_ready((fc_out, heads_out))

    # TODO(synk): the wrapped base LLM call `self.model.model(...)`, lm_head /
    # logits_processor / sampler / token_map remap are out of scope here.

    # ---- references ----
    fc_ref = ref_fc(inputs_embeds, prev_hidden, positions, w_fc)
    mlp_input_ref = jnp.concatenate([fc_ref, prev_hidden], axis=-1)   # (S, 2H)
    head_refs = [ref_mlp_head(mlp_input_ref, *hp) for hp in head_params]

    import numpy as np
    np.testing.assert_allclose(np.asarray(fc_out), np.asarray(fc_ref), rtol=1e-4, atol=1e-4)
    for h_idx, want in enumerate(head_refs):
        got = heads_out[:, h_idx * H:(h_idx + 1) * H]
        np.testing.assert_allclose(np.asarray(got), np.asarray(want), rtol=1e-4, atol=1e-4)

    print("KERNEL_OK")
</pallas_src>

<mosaic_0001>
module attributes {stable_mosaic.version = 11 : i64} {
  func.func @_gumiho_fused_kernel(%arg0: i32, %arg1: memref<8x32xf32, #tpu.memory_space<vmem>>, %arg2: memref<8x32xf32, #tpu.memory_space<vmem>>, %arg3: memref<8x1xi32, #tpu.memory_space<vmem>>, %arg4: memref<64x32xf32, #tpu.memory_space<vmem>>, %arg5: memref<64x64xf32, #tpu.memory_space<vmem>>, %arg6: memref<1x64xf32, #tpu.memory_space<vmem>>, %arg7: memref<5x64x64xf32, #tpu.memory_space<vmem>>, %arg8: memref<5x1x64xf32, #tpu.memory_space<vmem>>, %arg9: memref<8x128xf32, #tpu.memory_space<vmem>>) attributes {dimension_semantics = [#tpu.dimension_semantics<parallel>], iteration_bounds = array<i64: 1>, scalar_prefetch = 0 : i64, scratch_operands = 0 : i64, tpu.core_type = #tpu.core_type<tc>, window_params = [{transform_indices = @transform_0, window_bounds = array<i64: 8, 32>}, {transform_indices = @transform_1, window_bounds = array<i64: 8, 32>}, {transform_indices = @transform_2, window_bounds = array<i64: 8, 1>}, {pipeline_mode = #tpu.pipeline_mode<synchronous>, transform_indices = @transform_3, window_bounds = array<i64: 64, 32>}, {pipeline_mode = #tpu.pipeline_mode<synchronous>, transform_indices = @transform_4, window_bounds = array<i64: 64, 64>}, {pipeline_mode = #tpu.pipeline_mode<synchronous>, transform_indices = @transform_5, window_bounds = array<i64: 1, 64>}, {pipeline_mode = #tpu.pipeline_mode<synchronous>, transform_indices = @transform_6, window_bounds = array<i64: 5, 64, 64>}, {pipeline_mode = #tpu.pipeline_mode<synchronous>, transform_indices = @transform_7, window_bounds = array<i64: 5, 1, 64>}, {transform_indices = @transform_8, window_bounds = array<i64: 8, 128>}]} {
    %c0 = arith.constant 0 : index
    %c0_0 = arith.constant 0 : index
    %0 = vector.load %arg1[%c0, %c0_0] : memref<8x32xf32, #tpu.memory_space<vmem>>, vector<8x32xf32>
    %c0_1 = arith.constant 0 : index
    %c0_2 = arith.constant 0 : index
    %1 = vector.load %arg2[%c0_1, %c0_2] : memref<8x32xf32, #tpu.memory_space<vmem>>, vector<8x32xf32>
    %2 = tpu.concatenate %0, %1 in 1 : vector<8x32xf32>, vector<8x32xf32> -> vector<8x64xf32>
    %c0_3 = arith.constant 0 : index
    %c0_4 = arith.constant 0 : index
    %3 = vector.load %arg4[%c0_3, %c0_4] : memref<64x32xf32, #tpu.memory_space<vmem>>, vector<64x32xf32>
    %cst = arith.constant dense<0.000000e+00> : vector<8x32xf32>
    %4 = tpu.matmul %2, %3, %cst {dimension_numbers = #tpu.dot_dimension_numbers<[1], [0], [0], [1], [0, 0, 1, 1], [], []>} : vector<8x64xf32>, vector<64x32xf32>, vector<8x32xf32> -> vector<8x32xf32>
    %c0_5 = arith.constant 0 : index
    %c0_6 = arith.constant 0 : index
    %5 = vector.load %arg3[%c0_5, %c0_6] : memref<8x1xi32, #tpu.memory_space<vmem>>, vector<8x1xi32>
    %c0_i32 = arith.constant 0 : i32
    %6 = vector.broadcast %c0_i32 : i32 to vector<8x1xi32>
    %7 = arith.cmpi eq, %5, %6 : vector<8x1xi32>
    %cst_7 = arith.constant 0.000000e+00 : f32
    %8 = vector.shape_cast %7 : vector<8x1xi1> to vector<8x1xi1>
    %9 = vector.broadcast %8 : vector<8x1xi1> to vector<8x32xi1>
    %10 = vector.broadcast %cst_7 : f32 to vector<8x32xf32>
    %11 = arith.select %9, %10, %4 : vector<8x32xi1>, vector<8x32xf32>
    %12 = tpu.concatenate %11, %1 in 1 : vector<8x32xf32>, vector<8x32xf32> -> vector<8x64xf32>
    %c0_8 = arith.constant 0 : index
    %c0_9 = arith.constant 0 : index
    %13 = vector.load %arg5[%c0_8, %c0_9] : memref<64x64xf32, #tpu.memory_space<vmem>>, vector<64x64xf32>
    %cst_10 = arith.constant dense<0.000000e+00> : vector<8x64xf32>
    %14 = tpu.matmul %12, %13, %cst_10 {dimension_numbers = #tpu.dot_dimension_numbers<[1], [0], [0], [1], [0, 0, 1, 1], [], []>} : vector<8x64xf32>, vector<64x64xf32>, vector<8x64xf32> -> vector<8x64xf32>
    %c0_11 = arith.constant 0 : index
    %c0_12 = arith.constant 0 : index
    %15 = vector.load %arg6[%c0_11, %c0_12] : memref<1x64xf32, #tpu.memory_space<vmem>>, vector<1x64xf32>
    %16 = vector.broadcast %15 : vector<1x64xf32> to vector<8x64xf32>
    %17 = arith.addf %14, %16 : vector<8x64xf32>
    %18 = arith.negf %17 : vector<8x64xf32>
    %19 = math.exp %18 : vector<8x64xf32>
    %cst_13 = arith.constant 1.000000e+00 : f32
    %20 = vector.broadcast %cst_13 : f32 to vector<8x64xf32>
    %21 = arith.addf %20, %19 : vector<8x64xf32>
    %22 = arith.divf %20, %21 : vector<8x64xf32>
    %23 = arith.mulf %17, %22 : vector<8x64xf32>
    %c0_14 = arith.constant 0 : index
    %c0_15 = arith.constant 0 : index
    %c0_16 = arith.constant 0 : index
    %24 = vector.load %arg7[%c0_14, %c0_15, %c0_16] : memref<5x64x64xf32, #tpu.memory_space<vmem>>, vector<1x64x64xf32>
    %25 = vector.shape_cast %24 : vector<1x64x64xf32> to vector<64x64xf32>
    %cst_17 = arith.constant dense<0.000000e+00> : vector<8x64xf32>
    %26 = tpu.matmul %23, %25, %cst_17 {dimension_numbers = #tpu.dot_dimension_numbers<[1], [0], [0], [1], [0, 0, 1, 1], [], []>} : vector<8x64xf32>, vector<64x64xf32>, vector<8x64xf32> -> vector<8x64xf32>
    %c0_18 = arith.constant 0 : index
    %c0_19 = arith.constant 0 : index
    %c0_20 = arith.constant 0 : index
    %27 = vector.load %arg8[%c0_18, %c0_19, %c0_20] : memref<5x1x64xf32, #tpu.memory_space<vmem>>, vector<1x1x64xf32>
    %28 = vector.shape_cast %27 : vector<1x1x64xf32> to vector<1x64xf32>
    %29 = vector.broadcast %28 : vector<1x64xf32> to vector<8x64xf32>
    %30 = arith.addf %26, %29 : vector<8x64xf32>
    %31 = arith.negf %30 : vector<8x64xf32>
    %32 = math.exp %31 : vector<8x64xf32>
    %cst_21 = arith.constant 1.000000e+00 : f32
    %33 = vector.broadcast %cst_21 : f32 to vector<8x64xf32>
    %34 = arith.addf %33, %32 : vector<8x64xf32>
    %35 = arith.divf %33, %34 : vector<8x64xf32>
    %36 = arith.mulf %30, %35 : vector<8x64xf32>
    %37 = arith.addf %23, %36 : vector<8x64xf32>
    %c1 = arith.constant 1 : index
    %c0_22 = arith.constant 0 : index
    %c0_23 = arith.constant 0 : index
    %38 = vector.load %arg7[%c1, %c0_22, %c0_23] : memref<5x64x64xf32, #tpu.memory_space<vmem>>, vector<1x64x64xf32>
    %39 = vector.shape_cast %38 : vector<1x64x64xf32> to vector<64x64xf32>
    %cst_24 = arith.constant dense<0.000000e+00> : vector<8x64xf32>
    %40 = tpu.matmul %37, %39, %cst_24 {dimension_numbers = #tpu.dot_dimension_numbers<[1], [0], [0], [1], [0, 0, 1, 1], [], []>} : vector<8x64xf32>, vector<64x64xf32>, vector<8x64xf32> -> vector<8x64xf32>
    %c1_25 = arith.constant 1 : index
    %c0_26 = arith.constant 0 : index
    %c0_27 = arith.constant 0 : index
    %41 = vector.load %arg8[%c1_25, %c0_26, %c0_27] : memref<5x1x64xf32, #tpu.memory_space<vmem>>, vector<1x1x64xf32>
    %42 = vector.shape_cast %41 : vector<1x1x64xf32> to vector<1x64xf32>
    %43 = vector.broadcast %42 : vector<1x64xf32> to vector<8x64xf32>
    %44 = arith.addf %40, %43 : vector<8x64xf32>
    %45 = arith.negf %44 : vector<8x64xf32>
    %46 = math.exp %45 : vector<8x64xf32>
    %cst_28 = arith.constant 1.000000e+00 : f32
    %47 = vector.broadcast %cst_28 : f32 to vector<8x64xf32>
    %48 = arith.addf %47, %46 : vector<8x64xf32>
    %49 = arith.divf %47, %48 : vector<8x64xf32>
    %50 = arith.mulf %44, %49 : vector<8x64xf32>
    %51 = arith.addf %37, %50 : vector<8x64xf32>
    %c2 = arith.constant 2 : index
    %c0_29 = arith.constant 0 : index
    %c0_30 = arith.constant 0 : index
    %52 = vector.load %arg7[%c2, %c0_29, %c0_30] : memref<5x64x64xf32, #tpu.memory_space<vmem>>, vector<1x64x64xf32>
    %53 = vector.shape_cast %52 : vector<1x64x64xf32> to vector<64x64xf32>
    %cst_31 = arith.constant dense<0.000000e+00> : vector<8x64xf32>
    %54 = tpu.matmul %51, %53, %cst_31 {dimension_numbers = #tpu.dot_dimension_numbers<[1], [0], [0], [1], [0, 0, 1, 1], [], []>} : vector<8x64xf32>, vector<64x64xf32>, vector<8x64xf32> -> vector<8x64xf32>
    %c2_32 = arith.constant 2 : index
    %c0_33 = arith.constant 0 : index
    %c0_34 = arith.constant 0 : index
    %55 = vector.load %arg8[%c2_32, %c0_33, %c0_34] : memref<5x1x64xf32, #tpu.memory_space<vmem>>, vector<1x1x64xf32>
    %56 = vector.shape_cast %55 : vector<1x1x64xf32> to vector<1x64xf32>
    %57 = vector.broadcast %56 : vector<1x64xf32> to vector<8x64xf32>
    %58 = arith.addf %54, %57 : vector<8x64xf32>
    %59 = arith.negf %58 : vector<8x64xf32>
    %60 = math.exp %59 : vector<8x64xf32>
    %cst_35 = arith.constant 1.000000e+00 : f32
    %61 = vector.broadcast %cst_35 : f32 to vector<8x64xf32>
    %62 = arith.addf %61, %60 : vector<8x64xf32>
    %63 = arith.divf %61, %62 : vector<8x64xf32>
    %64 = arith.mulf %58, %63 : vector<8x64xf32>
    %65 = arith.addf %51, %64 : vector<8x64xf32>
    %c3 = arith.constant 3 : index
    %c0_36 = arith.constant 0 : index
    %c0_37 = arith.constant 0 : index
    %66 = vector.load %arg7[%c3, %c0_36, %c0_37] : memref<5x64x64xf32, #tpu.memory_space<vmem>>, vector<1x64x64xf32>
    %67 = vector.shape_cast %66 : vector<1x64x64xf32> to vector<64x64xf32>
    %cst_38 = arith.constant dense<0.000000e+00> : vector<8x64xf32>
    %68 = tpu.matmul %65, %67, %cst_38 {dimension_numbers = #tpu.dot_dimension_numbers<[1], [0], [0], [1], [0, 0, 1, 1], [], []>} : vector<8x64xf32>, vector<64x64xf32>, vector<8x64xf32> -> vector<8x64xf32>
    %c3_39 = arith.constant 3 : index
    %c0_40 = arith.constant 0 : index
    %c0_41 = arith.constant 0 : index
    %69 = vector.load %arg8[%c3_39, %c0_40, %c0_41] : memref<5x1x64xf32, #tpu.memory_space<vmem>>, vector<1x1x64xf32>
    %70 = vector.shape_cast %69 : vector<1x1x64xf32> to vector<1x64xf32>
    %71 = vector.broadcast %70 : vector<1x64xf32> to vector<8x64xf32>
    %72 = arith.addf %68, %71 : vector<8x64xf32>
    %73 = arith.negf %72 : vector<8x64xf32>
    %74 = math.exp %73 : vector<8x64xf32>
    %cst_42 = arith.constant 1.000000e+00 : f32
    %75 = vector.broadcast %cst_42 : f32 to vector<8x64xf32>
    %76 = arith.addf %75, %74 : vector<8x64xf32>
    %77 = arith.divf %75, %76 : vector<8x64xf32>
    %78 = arith.mulf %72, %77 : vector<8x64xf32>
    %79 = arith.addf %65, %78 : vector<8x64xf32>
    %c4 = arith.constant 4 : index
    %c0_43 = arith.constant 0 : index
    %c0_44 = arith.constant 0 : index
    %80 = vector.load %arg7[%c4, %c0_43, %c0_44] : memref<5x64x64xf32, #tpu.memory_space<vmem>>, vector<1x64x64xf32>
    %81 = vector.shape_cast %80 : vector<1x64x64xf32> to vector<64x64xf32>
    %cst_45 = arith.constant dense<0.000000e+00> : vector<8x64xf32>
    %82 = tpu.matmul %79, %81, %cst_45 {dimension_numbers = #tpu.dot_dimension_numbers<[1], [0], [0], [1], [0, 0, 1, 1], [], []>} : vector<8x64xf32>, vector<64x64xf32>, vector<8x64xf32> -> vector<8x64xf32>
    %c4_46 = arith.constant 4 : index
    %c0_47 = arith.constant 0 : index
    %c0_48 = arith.constant 0 : index
    %83 = vector.load %arg8[%c4_46, %c0_47, %c0_48] : memref<5x1x64xf32, #tpu.memory_space<vmem>>, vector<1x1x64xf32>
    %84 = vector.shape_cast %83 : vector<1x1x64xf32> to vector<1x64xf32>
    %85 = vector.broadcast %84 : vector<1x64xf32> to vector<8x64xf32>
    %86 = arith.addf %82, %85 : vector<8x64xf32>
    %87 = arith.negf %86 : vector<8x64xf32>
    %88 = math.exp %87 : vector<8x64xf32>
    %cst_49 = arith.constant 1.000000e+00 : f32
    %89 = vector.broadcast %cst_49 : f32 to vector<8x64xf32>
    %90 = arith.addf %89, %88 : vector<8x64xf32>
    %91 = arith.divf %89, %90 : vector<8x64xf32>
    %92 = arith.mulf %86, %91 : vector<8x64xf32>
    %93 = arith.addf %79, %92 : vector<8x64xf32>
    %cst_50 = arith.constant 0.000000e+00 : f32
    %94 = vector.broadcast %cst_50 : f32 to vector<8x32xf32>
    %95 = tpu.concatenate %11, %93, %94 in 1 : vector<8x32xf32>, vector<8x64xf32>, vector<8x32xf32> -> vector<8x128xf32>
    %c0_51 = arith.constant 0 : index
    %c0_52 = arith.constant 0 : index
    %96 = vector.load %arg9[%c0_51, %c0_52] : memref<8x128xf32, #tpu.memory_space<vmem>>, vector<8x128xf32>
    tpu.vector_store %arg9[%c0_51, %c0_52], %95 {strides = array<i32>} : memref<8x128xf32, #tpu.memory_space<vmem>>, vector<8x128xf32>,
    return
  }
  func.func @transform_0(%arg0: i32) -> (i32, i32) {
    %c0_i32 = arith.constant 0 : i32
    %c0_i32_0 = arith.constant 0 : i32
    return %arg0, %c0_i32 : i32, i32
  }
  func.func @transform_1(%arg0: i32) -> (i32, i32) {
    %c0_i32 = arith.constant 0 : i32
    %c0_i32_0 = arith.constant 0 : i32
    return %arg0, %c0_i32 : i32, i32
  }
  func.func @transform_2(%arg0: i32) -> (i32, i32) {
    %c0_i32 = arith.constant 0 : i32
    %c0_i32_0 = arith.constant 0 : i32
    return %arg0, %c0_i32 : i32, i32
  }
  func.func @transform_3(%arg0: i32) -> (i32, i32) {
    %c0_i32 = arith.constant 0 : i32
    %c0_i32_0 = arith.constant 0 : i32
    %c0_i32_1 = arith.constant 0 : i32
    return %c0_i32, %c0_i32_0 : i32, i32
  }
  func.func @transform_4(%arg0: i32) -> (i32, i32) {
    %c0_i32 = arith.constant 0 : i32
    %c0_i32_0 = arith.constant 0 : i32
    %c0_i32_1 = arith.constant 0 : i32
    return %c0_i32, %c0_i32_0 : i32, i32
  }
  func.func @transform_5(%arg0: i32) -> (i32, i32) {
    %c0_i32 = arith.constant 0 : i32
    %c0_i32_0 = arith.constant 0 : i32
    %c0_i32_1 = arith.constant 0 : i32
    return %c0_i32, %c0_i32_0 : i32, i32
  }
  func.func @transform_6(%arg0: i32) -> (i32, i32, i32) {
    %c0_i32 = arith.constant 0 : i32
    %c0_i32_0 = arith.constant 0 : i32
    %c0_i32_1 = arith.constant 0 : i32
    %c0_i32_2 = arith.constant 0 : i32
    return %c0_i32, %c0_i32_0, %c0_i32_1 : i32, i32, i32
  }
  func.func @transform_7(%arg0: i32) -> (i32, i32, i32) {
    %c0_i32 = arith.constant 0 : i32
    %c0_i32_0 = arith.constant 0 : i32
    %c0_i32_1 = arith.constant 0 : i32
    %c0_i32_2 = arith.constant 0 : i32
    return %c0_i32, %c0_i32_0, %c0_i32_1 : i32, i32, i32
  }
  func.func @transform_8(%arg0: i32) -> (i32, i32) {
    %c0_i32 = arith.constant 0 : i32
    %c0_i32_0 = arith.constant 0 : i32
    return %arg0, %c0_i32 : i32, i32
  }
}

</mosaic_0001>

<bundles_post_ra>
// kernel: tpu_custom_call.1
= control target key start
LH: loop header
LB: loop body
LE: loop exit
PB: predicated region body
PF: predicated region fallthrough
CT: control target
= control target key end

     0   :  { %13 = vsyncpa [#allocation3], 0  ;;  %s1345_s0 = inlined_call_operand.vmem [shape: f32[8,32], index: 0, kind: input, shape index: {}]   ;;  %s1346_s1 = inlined_call_operand.vmem [shape: f32[8,32], index: 1, kind: input, shape index: {}]   ;;  %s1347_s2 = inlined_call_operand.vmem [shape: s32[8,1], index: 2, kind: input, shape index: {}]   ;;  %s1348_s3 = inlined_call_operand.vmem [shape: f32[64,32], index: 3, kind: input, shape index: {}]   ;;  %s1349_s4 = inlined_call_operand.vmem [shape: f32[64,64], index: 4, kind: input, shape index: {}]   ;;  %s1350_s5 = inlined_call_operand.vmem [shape: f32[1,64], index: 5, kind: input, shape index: {}]   ;;  %s1351_s6 = inlined_call_operand.hbm [shape: f32[5,64,64], index: 6, kind: input, shape index: {}]   ;;  %s1352_s7 = inlined_call_operand.vmem [shape: f32[5,1,64], index: 7, kind: input, shape index: {}]   ;;  %s1353_s8 = inlined_call_operand.hbm [shape: f32[8,128], index: 8, kind: output, shape index: {}]  }
   0x1   :  { %14 = vsyncpa [#allocation4], 0  ;;  %s1134_s27 = smov [#allocation2]   ;;  %s1086_s9 = scalar_lea.hbm %s1351_s6, 5120 }
   0x2   :  { %s32_s28 = sshll.u32 %s1134_s27, 4  ;;  %p1087_p0 = scmp.ne.s32.totalorder %s1351_s6, %s1086_s9  ;;  %s33_s28 = int_to_ptr.vmem [resolvable:$true] %s32_s28 }
   0x3   :  { %p1090_p1 = scmp.lt.u32.totalorder %s1086_s9, %s1351_s6 }
   0x5   :  { %p1092_p2 = pnand %p1090_p1, %p1087_p0 }
   0x7   :  { %1095 = shalt.err (!%p1092_p2)
}
   0x8   :  { %s1096_s14 = scalar_lea.vmem %s33_s28, 5120  ;;  %p1101_p4 = scmp.lt.s32.totalorder %s33_s28, %s33_s28 }
   0x9   :  { %p1097_p3 = scmp.ne.s32.totalorder %s33_s28, %s1096_s14  ;;  %p1102_p5 = scmp.lt.s32.totalorder %s1096_s14, %s1096_s14 }
   0xb   :  { %p1103_p6 = por %p1102_p5, %p1101_p4 }
   0xd   :  { %p1104_p7 = pnand %p1103_p6, %p1097_p3 }
   0xf   :  { %1107 = shalt.err (!%p1104_p7)
}
  0x10   :  { %s1135_s15 = smov 128   ;;  %s1136_s16 = smov 8  }
  0x11   :  { %38 = dma.hbm_to_vmem [thread:$0]  %s1351_s6, 5120, %s33_s28, [#allocation3], %s1135_s15, %s1135_s15, %s1136_s16  }
  0x12   :  { %1130 = dma.done.wait [#allocation3], 5120  }
  0x13   :  { %1131 = vsyncadd [#allocation3], 4294962176  ;;  %v1137_v0 = vmov 0.0|0.0   ;;  %vm1138_vm0 = vmmov 0   ;;  %v1139_v1 = vmov 0.0   ;;  %v1140_v2 = vmov 0  }
  0x14   :  { %968 = vmatprep.subr.bf16.mxu0 %v1137_v0  ;;  %980 = vmatprep.subr.bf16.mxu1 %v1137_v0  ;;  %v45_v3 = vld [vmem:[%s1346_s1] sm:$0xff]  ;;  %v53_v5 = vld [vmem:[%s1348_s3 + $0x8] sm:$0xff]  ;;  %s1141_s24 = smov 32   ;;  %v54_v7 = vld [vmem:[%s1348_s3 + $0x10] sm:$0xff]  ;;  %vm50_vm2 = vcmask 261120   ;;  %vm60_vm3 = vcmask 523264  }
  0x15   :  { %851 = vmatprep.mubr.msk.f32.mxu0 %vm1138_vm0, %v1139_v1  ;;  %1061 = vset.pattern.permute.xlu0 %v1140_v2  ;;  %v52_v4 = vld [vmem:[%s1348_s3] sm:$0xff]  ;;  %v55_v8 = vld [vmem:[%s1348_s3 + $0x18] sm:$0xff]  ;;  %v57_v11 = vld [vmem:[%s1348_s3 + $0x28] sm:$0xff]  ;;  %s1142_s18 = smov [#allocation5]   ;;  %vm731_vm5 = vcmask 785408  }
  0x16   :  { %870 = vmatprep.mubr.msk.f32.mxu1 %vm1138_vm0, %v1139_v1  ;;  %47 = vrot.lane.b32.xlu0 %v45_v3, %s1141_s24  ;;  %v969_v6 = vpack.c.bf16 %v53_v5, %v52_v4  ;;  %v56_v9 = vld [vmem:[%s1348_s3 + $0x20] sm:$0xff]  ;;  %v972_v10 = vpack.c.bf16 %v55_v8, %v54_v7  ;;  %v144_v14 = vld [vmem:[%s1349_s4 + $0x8] sm:$0xff]  ;;  %v145_v15 = vld [vmem:[%s1349_s4 + $0x10] sm:$0xff]  ;;  %s740_s19 = sshll.u32 %s1142_s18, 4  ;;  %s741_s19 = int_to_ptr.vmem [resolvable:$true] %s740_s19 }
  0x17   :  { %v134_v12 = vld [vmem:[%s1347_s2] sm:$0xff]  ;;  %v146_v16 = vld [vmem:[%s1349_s4 + $0x18] sm:$0xff]  ;;  %v975_v19 = vpack.c.bf16 %v57_v11, %v56_v9  ;;  %v58_v20 = vld [vmem:[%s1348_s3 + $0x30] sm:$0xff]  ;;  %p1113_p9 = scmp.lt.s32.totalorder %s741_s19, %s741_s19 }
  0x18   :  { %970 = vmatpush3.bf16.msra.mxu0 %v969_v6  ;;  %v143_v13 = vld [vmem:[%s1349_s4] sm:$0xff]  ;;  %vm135_vm1 = vcmp.eq.s32.totalorder %v134_v12, 0  ;;  %v984_v21 = vpack.c.bf16 %v146_v16, %v145_v15  ;;  %v59_v22 = vld [vmem:[%s1348_s3 + $0x38] sm:$0xff]  ;;  %v148_v24 = vld [vmem:[%s1349_s4 + $0x28] sm:$0xff] }
  0x19   :  { %971 = vmatprep.subr.bf16.mxu0 %v1137_v0  ;;  %v136_v17 = vsel %vm135_vm1, 1, %v1140_v2  ;;  %v981_v18 = vpack.c.bf16 %v144_v14, %v143_v13  ;;  %v147_v23 = vld [vmem:[%s1349_s4 + $0x20] sm:$0xff]  ;;  %v978_v25 = vpack.c.bf16 %v59_v22, %v58_v20  ;;  %v149_v30 = vld [vmem:[%s1349_s4 + $0x30] sm:$0xff]  ;;  %v150_v31 = vld [vmem:[%s1349_s4 + $0x38] sm:$0xff] }
  0x1a   :  { %138 = vperm.xlu0 %1061, %v136_v17   ;;  %v987_v26 = vpack.c.bf16 %v148_v24, %v147_v23  ;;  %v44_v27 = vld [vmem:[%s1345_s0] sm:$0xff]  ;;  %v990_v32 = vpack.c.bf16 %v150_v31, %v149_v30  ;;  %v239_v39 = vld [vmem:[#allocation2 + $0x8] sm:$0xff]  ;;  %v240_v41 = vld [vmem:[#allocation2 + $0x10] sm:$0xff] }
  0x1b   :  { %982 = vmatpush3.bf16.msra.mxu1 %v981_v18  ;;  %v238_v38 = vld [vmem:[#allocation2] sm:$0xff]  ;;  %v241_v42 = vld [vmem:[#allocation2 + $0x18] sm:$0xff]  ;;  %v243_v45 = vld [vmem:[#allocation2 + $0x28] sm:$0xff] }
  0x1c   :  { %973 = vmatpush3.bf16.msra.mxu0 %v972_v10  ;;  %983 = vmatprep.subr.bf16.mxu1 %v1137_v0  ;;  %v993_v40 = vpack.c.bf16 %v239_v39, %v238_v38  ;;  %v996_v43 = vpack.c.bf16 %v241_v42, %v240_v41  ;;  %v242_v44 = vld [vmem:[#allocation2 + $0x20] sm:$0xff]  ;;  %v244_v47 = vld [vmem:[#allocation2 + $0x30] sm:$0xff]  ;;  %v245_v48 = vld [vmem:[#allocation2 + $0x38] sm:$0xff] }
  0x1d   :  { %974 = vmatprep.subr.bf16.mxu0 %v1137_v0  ;;  %v999_v46 = vpack.c.bf16 %v243_v45, %v242_v44  ;;  %v1002_v49 = vpack.c.bf16 %v245_v48, %v244_v47  ;;  %v750_v50 = vld [vmem:[%s1350_s5] ss:$0 sm:$0xff]  ;;  %v336_v60 = vld [vmem:[#allocation2 + $0x48] sm:$0xff]  ;;  %v337_v62 = vld [vmem:[#allocation2 + $0x50] sm:$0xff] }
  0x1e   :  { %v335_v59 = vld [vmem:[#allocation2 + $0x40] sm:$0xff]  ;;  %v338_v63 = vld [vmem:[#allocation2 + $0x58] sm:$0xff]  ;;  %v340_v4 = vld [vmem:[#allocation2 + $0x68] sm:$0xff] }
  0x1f   :  { %985 = vmatpush3.bf16.msra.mxu1 %v984_v21  ;;  %v1005_v61 = vpack.c.bf16 %v336_v60, %v335_v59  ;;  %v1008_v2 = vpack.c.bf16 %v338_v63, %v337_v62  ;;  %v339_v3 = vld [vmem:[#allocation2 + $0x60] sm:$0xff]  ;;  %v341_v6 = vld [vmem:[#allocation2 + $0x70] sm:$0xff]  ;;  %v342_v7 = vld [vmem:[#allocation2 + $0x78] sm:$0xff] }
  0x20   :  { %976 = vmatpush3.bf16.msra.mxu0 %v975_v19  ;;  %986 = vmatprep.subr.bf16.mxu1 %v1137_v0  ;;  %v1011_v5 = vpack.c.bf16 %v340_v4, %v339_v3  ;;  %v1014_v8 = vpack.c.bf16 %v342_v7, %v341_v6  ;;  %v753_v9 = vld [vmem:[%s1352_s7] ss:$0 sm:$0xff]  ;;  %v434_v20 = vld [vmem:[#allocation2 + $0x88] sm:$0xff]  ;;  %v435_v22 = vld [vmem:[#allocation2 + $0x90] sm:$0xff] }
  0x21   :  { %977 = vmatprep.subr.bf16.mxu0 %v1137_v0  ;;  %v433_v19 = vld [vmem:[#allocation2 + $0x80] sm:$0xff]  ;;  %v436_v23 = vld [vmem:[#allocation2 + $0x98] sm:$0xff]  ;;  %v533_v45 = vld [vmem:[#allocation2 + $0xd0] sm:$0xff] }
  0x22   :  { %v1017_v21 = vpack.c.bf16 %v434_v20, %v433_v19  ;;  %v1020_v24 = vpack.c.bf16 %v436_v23, %v435_v22  ;;  %v757_v31 = vld [vmem:[%s1352_s7 + $0x1] ss:$0 sm:$0xff]  ;;  %v631_v4 = vld [vmem:[#allocation2 + $0x110] sm:$0xff] }
  0x23   :  { %988 = vmatpush3.bf16.msra.mxu1 %v987_v26  ;;  %v438_v26 = vld [vmem:[#allocation2 + $0xa8] sm:$0xff]  ;;  %v531_v42 = vld [vmem:[#allocation2 + $0xc0] sm:$0xff] }
  0x24   :  { %979 = vmatpush3.bf16.msra.mxu0 %v978_v25  ;;  %989 = vmatprep.subr.bf16.mxu1 %v1137_v0  ;;  %v437_v25 = vld [vmem:[#allocation2 + $0xa0] sm:$0xff] }
  0x25   :  { %992 = vmatprep.subr.bf16.mxu0 %v1137_v0  ;;  %v535_v48 = vld [vmem:[#allocation2 + $0xe0] sm:$0xff] }
  0x26   :  { %v629_v63 = vld [vmem:[#allocation2 + $0x100] sm:$0xff] }
  0x27   :  { %991 = vmatpush3.bf16.msra.mxu1 %v990_v32  ;;  %v633_v7 = vld [vmem:[#allocation2 + $0x120] sm:$0xff] }
  0x28   :  { %1004 = vmatprep.subr.bf16.mxu1 %v1137_v0 }
  0x88   :  { %v48_v28 = vpop.permute.xlu0 %47 }
  0x89   :  { %v51_v29 = vsel %vm50_vm2, %v44_v27, %v48_v28  ;;  %v1023_v27 = vpack.c.bf16 %v438_v26, %v437_v25 }
  0x8a   :  { %852 = vmatmul.mubr.msk.f32.vlgmr.msra.gmra.mrb[0].mxu0 %vm60_vm3, %v51_v29  ;;  %v440_v29 = vld [vmem:[#allocation2 + $0xb8] sm:$0xff] }
  0x8b   :  { %889 = vmatprep.mubr.msk.f32.mxu0 %vm1138_vm0, %v1139_v1  ;;  %994 = vmatpush3.bf16.msra.mxu0 %v993_v40 }
  0x8c   :  { %995 = vmatprep.subr.bf16.mxu0 %v1137_v0 }
  0x8f   :  { %997 = vmatpush3.bf16.msra.mxu0 %v996_v43  ;;  %v532_v43 = vld [vmem:[#allocation2 + $0xc8] sm:$0xff] }
  0x90   :  { %998 = vmatprep.subr.bf16.mxu0 %v1137_v0  ;;  %v1029_v44 = vpack.c.bf16 %v532_v43, %v531_v42 }
  0x93   :  { %1000 = vmatpush3.bf16.msra.mxu0 %v999_v46  ;;  %v534_v46 = vld [vmem:[#allocation2 + $0xd8] sm:$0xff] }
  0x94   :  { %1001 = vmatprep.subr.bf16.mxu0 %v1137_v0  ;;  %v1032_v47 = vpack.c.bf16 %v534_v46, %v533_v45 }
  0x97   :  { %1003 = vmatpush3.bf16.msra.mxu0 %v1002_v49  ;;  %v536_v49 = vld [vmem:[#allocation2 + $0xe8] sm:$0xff] }
  0x98   :  { %1016 = vmatprep.subr.bf16.mxu0 %v1137_v0 }
  0x99   :  { %v139_v33 = vpop.permute.xlu0 %138 }
  0x9a   :  { %vm140_vm4 = vcmp.eq.s32.totalorder %v139_v33, 1 }
 0x15d   :  { %v130_v34 = vpop.f32.mrb[0].mxu0 }
 0x15e   :  { %v1276_v35 = vsel %vm140_vm4, 0.0, %v130_v34  ;;  %v853_v36 = vpop.f32.mrb[1].mxu0 }
 0x15f   :  { %v142_v37 = vsel %vm50_vm2, %v1276_v35, %v48_v28  ;;  %v439_v28 = vld [vmem:[#allocation2 + $0xb0] sm:$0xff] }
 0x160   :  { %871 = vmatmul.mubr.msk.f32.vlgmr.msra.gmra.mrb[0].mxu1 %vm60_vm3, %v142_v37  ;;  %v1026_v30 = vpack.c.bf16 %v440_v29, %v439_v28 }
 0x161   :  { %908 = vmatprep.mubr.msk.f32.mxu1 %vm1138_vm0, %v1139_v1  ;;  %1006 = vmatpush3.bf16.msra.mxu1 %v1005_v61 }
 0x162   :  { %1007 = vmatprep.subr.bf16.mxu1 %v1137_v0 }
 0x165   :  { %1009 = vmatpush3.bf16.msra.mxu1 %v1008_v2  ;;  %v630_v2 = vld [vmem:[#allocation2 + $0x108] sm:$0xff] }
 0x166   :  { %1010 = vmatprep.subr.bf16.mxu1 %v1137_v0  ;;  %v1041_v3 = vpack.c.bf16 %v630_v2, %v629_v63 }
 0x169   :  { %1012 = vmatpush3.bf16.msra.mxu1 %v1011_v5  ;;  %v632_v5 = vld [vmem:[#allocation2 + $0x118] sm:$0xff] }
 0x16a   :  { %1013 = vmatprep.subr.bf16.mxu1 %v1137_v0  ;;  %v1044_v6 = vpack.c.bf16 %v632_v5, %v631_v4 }
 0x16d   :  { %1015 = vmatpush3.bf16.msra.mxu1 %v1014_v8  ;;  %v634_v8 = vld [vmem:[#allocation2 + $0x128] sm:$0xff] }
 0x16e   :  { %1028 = vmatprep.subr.bf16.mxu1 %v1137_v0 }
 0x233   :  { %v227_v51 = vpop.f32.mrb[0].mxu1 }
 0x234   :  { %v228_v52 = vadd.f32 %v750_v50, %v227_v51  ;;  %v872_v53 = vpop.f32.mrb[1].mxu1  ;;  %v1035_v50 = vpack.c.bf16 %v536_v49, %v535_v48  ;;  %v537_v51 = vld [vmem:[#allocation2 + $0xf0] sm:$0xff] }
 0x235   :  { %v761_v53 = vld [vmem:[%s1352_s7 + $0x2] ss:$0 sm:$0xff] }
 0x236   :  { %v752_v54 = vmul.f32 -1.442695, %v228_v52 }
 0x238   :  { %1062 = vpow2.f32 %v752_v54 }
 0x242   :  { %v1063_v55 = vpop.eup %1062 }
 0x243   :  { %v234_v56 = vadd.f32 1.0, %v1063_v55 }
 0x245   :  { %1064 = vrcp.f32 %v234_v56 }
 0x24f   :  { %v1065_v57 = vpop.eup %1064 }
 0x250   :  { %v237_v58 = vmul.f32 %v1065_v57, %v228_v52 }
 0x252   :  { %890 = vmatmul.mubr.msk.f32.vlgmr.msra.gmra.mrb[2].mxu0 %vm60_vm3, %v237_v58 }
 0x253   :  { %927 = vmatprep.mubr.msk.f32.mxu0 %vm1138_vm0, %v1139_v1  ;;  %1018 = vmatpush3.bf16.msra.mxu0 %v1017_v21 }
 0x254   :  { %1019 = vmatprep.subr.bf16.mxu0 %v1137_v0 }
 0x257   :  { %1021 = vmatpush3.bf16.msra.mxu0 %v1020_v24 }
 0x258   :  { %1022 = vmatprep.subr.bf16.mxu0 %v1137_v0 }
 0x25b   :  { %1024 = vmatpush3.bf16.msra.mxu0 %v1023_v27 }
 0x25c   :  { %1025 = vmatprep.subr.bf16.mxu0 %v1137_v0 }
 0x25f   :  { %1027 = vmatpush3.bf16.msra.mxu0 %v1026_v30 }
 0x260   :  { %1040 = vmatprep.subr.bf16.mxu0 %v1137_v0 }
 0x325   :  { %v322_v10 = vpop.f32.mrb[2].mxu0 }
 0x326   :  { %v323_v11 = vadd.f32 %v753_v9, %v322_v10  ;;  %v891_v12 = vpop.f32.mrb[3].mxu0  ;;  %v1047_v9 = vpack.c.bf16 %v634_v8, %v633_v7  ;;  %v635_v10 = vld [vmem:[#allocation2 + $0x130] sm:$0xff] }
 0x328   :  { %v755_v13 = vmul.f32 -1.442695, %v323_v11 }
 0x32a   :  { %1066 = vpow2.f32 %v755_v13  ;;  %v765_v13 = vld [vmem:[%s1352_s7 + $0x3] ss:$0 sm:$0xff] }
 0x334   :  { %v1067_v14 = vpop.eup %1066 }
 0x335   :  { %v329_v15 = vadd.f32 1.0, %v1067_v14 }
 0x337   :  { %1068 = vrcp.f32 %v329_v15 }
 0x341   :  { %v1069_v16 = vpop.eup %1068 }
 0x342   :  { %v332_v17 = vmul.f32 %v1069_v16, %v323_v11  ;;  %v636_v11 = vld [vmem:[#allocation2 + $0x138] sm:$0xff] }
 0x343   :  { %v1050_v12 = vpack.c.bf16 %v636_v11, %v635_v10 }
 0x344   :  { %v333_v18 = vadd.f32 %v332_v17, %v237_v58 }
 0x346   :  { %909 = vmatmul.mubr.msk.f32.vlgmr.msra.gmra.mrb[2].mxu1 %vm60_vm3, %v333_v18 }
 0x347   :  { %946 = vmatprep.mubr.msk.f32.mxu1 %vm1138_vm0, %v1139_v1  ;;  %1030 = vmatpush3.bf16.msra.mxu1 %v1029_v44 }
 0x348   :  { %1031 = vmatprep.subr.bf16.mxu1 %v1137_v0 }
 0x34b   :  { %1033 = vmatpush3.bf16.msra.mxu1 %v1032_v47 }
 0x34c   :  { %1034 = vmatprep.subr.bf16.mxu1 %v1137_v0 }
 0x34f   :  { %1036 = vmatpush3.bf16.msra.mxu1 %v1035_v50 }
 0x350   :  { %1037 = vmatprep.subr.bf16.mxu1 %v1137_v0 }
 0x419   :  { %v420_v32 = vpop.f32.mrb[2].mxu1 }
 0x41a   :  { %v421_v33 = vadd.f32 %v757_v31, %v420_v32  ;;  %v910_v34 = vpop.f32.mrb[3].mxu1 }
 0x41c   :  { %v759_v36 = vmul.f32 -1.442695, %v421_v33 }
 0x41e   :  { %1070 = vpow2.f32 %v759_v36 }
 0x428   :  { %v1071_v37 = vpop.eup %1070 }
 0x429   :  { %v427_v38 = vadd.f32 1.0, %v1071_v37 }
 0x42b   :  { %1072 = vrcp.f32 %v427_v38 }
 0x435   :  { %v1073_v39 = vpop.eup %1072 }
 0x436   :  { %v430_v40 = vmul.f32 %v1073_v39, %v421_v33 }
 0x438   :  { %v431_v41 = vadd.f32 %v430_v40, %v333_v18 }
 0x43a   :  { %928 = vmatmul.mubr.msk.f32.vlgmr.msra.gmra.mrb[4].mxu0 %vm60_vm3, %v431_v41 }
 0x43b   :  { %965 = vmatprep.mubr.msk.f32.mxu0 %vm1138_vm0, %v1139_v1  ;;  %v538_v1 = vld [vmem:[#allocation2 + $0xf8] sm:$0xff]  ;;  %1042 = vmatpush3.bf16.msra.mxu0 %v1041_v3 }
 0x43c   :  { %v1038_v52 = vpack.c.bf16 %v538_v1, %v537_v51  ;;  %1043 = vmatprep.subr.bf16.mxu0 %v1137_v0 }
 0x43e   :  { %1039 = vmatpush3.bf16.msra.mxu1 %v1038_v52 }
 0x43f   :  { %1045 = vmatpush3.bf16.msra.mxu0 %v1044_v6 }
 0x440   :  { %1046 = vmatprep.subr.bf16.mxu0 %v1137_v0 }
 0x443   :  { %1048 = vmatpush3.bf16.msra.mxu0 %v1047_v9 }
 0x444   :  { %1049 = vmatprep.subr.bf16.mxu0 %v1137_v0  ;;  %v769_v0 = vld [vmem:[%s1352_s7 + $0x4] ss:$0 sm:$0xff]  ;;  %s1108_s7 = scalar_lea.vmem %s741_s19, 128 }
 0x445   :  { %p1109_p8 = scmp.ne.s32.totalorder %s741_s19, %s1108_s7  ;;  %p1114_p10 = scmp.lt.s32.totalorder %s1108_s7, %s1108_s7 }
 0x447   :  { %1051 = vmatpush3.bf16.msra.mxu0 %v1050_v12  ;;  %p1115_p11 = por %p1114_p10, %p1113_p9 }
 0x449   :  { %p1116_p12 = pnand %p1115_p11, %p1109_p8 }
 0x50d   :  { %v518_v54 = vpop.f32.mrb[4].mxu0 }
 0x50e   :  { %v519_v55 = vadd.f32 %v761_v53, %v518_v54  ;;  %v929_v56 = vpop.f32.mrb[5].mxu0 }
 0x510   :  { %v763_v57 = vmul.f32 -1.442695, %v519_v55 }
 0x512   :  { %1074 = vpow2.f32 %v763_v57 }
 0x51c   :  { %v1075_v58 = vpop.eup %1074 }
 0x51d   :  { %v525_v59 = vadd.f32 1.0, %v1075_v58 }
 0x51f   :  { %1076 = vrcp.f32 %v525_v59 }
 0x529   :  { %v1077_v60 = vpop.eup %1076 }
 0x52a   :  { %v528_v61 = vmul.f32 %v1077_v60, %v519_v55 }
 0x52c   :  { %v529_v62 = vadd.f32 %v528_v61, %v431_v41 }
 0x52e   :  { %947 = vmatmul.mubr.msk.f32.vlgmr.msra.gmra.mrb[4].mxu1 %vm60_vm3, %v529_v62 }
 0x601   :  { %v616_v14 = vpop.f32.mrb[4].mxu1 }
 0x602   :  { %v617_v15 = vadd.f32 %v765_v13, %v616_v14  ;;  %v948_v16 = vpop.f32.mrb[5].mxu1 }
 0x604   :  { %v767_v17 = vmul.f32 -1.442695, %v617_v15 }
 0x606   :  { %1078 = vpow2.f32 %v767_v17 }
 0x610   :  { %v1079_v18 = vpop.eup %1078 }
 0x611   :  { %v623_v19 = vadd.f32 1.0, %v1079_v18 }
 0x613   :  { %1080 = vrcp.f32 %v623_v19 }
 0x61d   :  { %v1081_v20 = vpop.eup %1080 }
 0x61e   :  { %v626_v21 = vmul.f32 %v1081_v20, %v617_v15 }
 0x620   :  { %v627_v22 = vadd.f32 %v626_v21, %v529_v62 }
 0x622   :  { %966 = vmatmul.mubr.msk.f32.vlgmr.msra.gmra.mrb[6].mxu0 %vm60_vm3, %v627_v22 }
 0x6f5   :  { %v714_v23 = vpop.f32.mrb[6].mxu0 }
 0x6f6   :  { %v715_v24 = vadd.f32 %v769_v0, %v714_v23  ;;  %v967_v25 = vpop.f32.mrb[7].mxu0 }
 0x6f8   :  { %v771_v26 = vmul.f32 -1.442695, %v715_v24 }
 0x6fa   :  { %1082 = vpow2.f32 %v771_v26 }
 0x704   :  { %v1083_v27 = vpop.eup %1082 }
 0x705   :  { %v721_v28 = vadd.f32 1.0, %v1083_v27 }
 0x707   :  { %1084 = vrcp.f32 %v721_v28 }
 0x711   :  { %v1085_v29 = vpop.eup %1084 }
 0x712   :  { %v724_v30 = vmul.f32 %v1085_v29, %v715_v24 }
 0x714   :  { %v725_v31 = vadd.f32 %v724_v30, %v627_v22 }
 0x716   :  { %727 = vrot.lane.b32.xlu1 %v725_v31, %s1141_s24 }
 0x788   :  { %v728_v32 = vpop.permute.xlu1 %727 }
 0x789   :  { %v730_v33 = vsel %vm50_vm2, %v1276_v35, %v728_v32 }
 0x78a   :  { %v732_v34 = vsel %vm731_vm5, %v730_v33, 0.0 }
 0x78b   :  { %733 = vst [vmem:[#allocation5] sm:$0xff] %v732_v34 }
 0x78c   :  { %1119 = shalt.err (!%p1116_p12)
}
 0x78d   :  { %s1120_s24 = scalar_lea.hbm %s1353_s8, 128 }
 0x78e   :  { %p1121_p13 = scmp.ne.s32.totalorder %s1353_s8, %s1120_s24  ;;  %p1124_p0 = scmp.lt.u32.totalorder %s1120_s24, %s1353_s8 }
 0x790   :  { %p1126_p1 = pnand %p1124_p0, %p1121_p13 }
 0x792   :  { %1129 = shalt.err (!%p1126_p1)
}
 0x793   :  { %743 = dma.vmem_to_hbm [thread:$0]  %s741_s19, 128, %s1353_s8, [#allocation4]  }
 0x794   :  { %1132 = dma.done.wait [#allocation4], 128  }
 0x795   :  { %1133 = vsyncadd [#allocation4], 4294967168 }
 0x796   :  { %747 = vsyncpa [#allocation3], 1 }
 0x797   :  { %748 = vsyncpa [#allocation4], 1 }

</bundles_post_ra>
